<compile_context>
chip_gen: v7x
topology: tpu7x:2x2x1
jax: 0.10.0
libtpu: 0.0.40
codegen_flags: <defaults>
</compile_context>

<pallas_src>
import jax
import jax.numpy as jnp
from jax import lax
from jax.experimental import pallas as pl
from jax.experimental.pallas import tpu as pltpu


def _round_up(x, m):
    return (x + m - 1) // m * m


def _cdiv(a, b):
    return (a + b - 1) // b


def _mlp_kernel(x_ref, w0_ref, b0_ref, w1_ref, b1_ref, w2_ref, b2_ref, o_ref):
    """Fused 3-layer MLP (Linear-ReLU-Linear-ReLU-Linear).

    x_ref : (tile, in_dim)   natural layout, contiguous per-step DMA
    w0    : (hid, in_dim)    PyTorch nn.Linear layout, grid-invariant
    w1    : (hid, hid)
    w2    : (out_dim, hid)
    b0,b1 : (hid, 1) f32     broadcast along the lane (batch) axis
    b2    : (1, out_dim) f32 broadcast along the sublane (batch) axis
    o_ref : (tile, out_dim)  interface layout, stored directly (no XLA transpose pass)
    """
    x = x_ref[...]  # compute dtype (bf16 by default, f32 optional)

    # Layer 0: contract in_dim of both operands -> (hid, tile) feature-major,
    # so the batch lives on the lane axis for bias/ReLU and the next two dots.
    h = lax.dot_general(w0_ref[...], x, (((1,), (1,)), ((), ())),
                        preferred_element_type=jnp.float32)
    h = jnp.maximum(h + b0_ref[...], 0.0)

    # Layer 1: re-cast activations to the weight dtype so the MXU sees full
    # bf16 operands (f32 accumulation kept via preferred_element_type).
    h = lax.dot_general(w1_ref[...], h.astype(w1_ref.dtype),
                        (((1,), (0,)), ((), ())),
                        preferred_element_type=jnp.float32)
    h = jnp.maximum(h + b1_ref[...], 0.0)

    # Layer 2: contract h's feature axis (dim 0) with w2's in_features (dim 1)
    # -> (tile, out_dim): output produced directly in the interface layout.
    out = lax.dot_general(h.astype(w2_ref.dtype), w2_ref[...],
                          (((0,), (1,)), ((), ())),
                          preferred_element_type=jnp.float32)
    o_ref[...] = (out + b2_ref[...]).astype(o_ref.dtype)


def continuous_action_embedding(x, params, *, tile_b=1024,
                                weights_dtype=jnp.bfloat16, out_dtype=None):
    """Forward pass of ContinuousActionEmbedding (hidden_depth=2).

    x             : (B, input_dim)
    params        : PyTorch-layout dict: wN (out_features, in_features), bN (out_features,)
    weights_dtype : MXU compute dtype for weights + activations (f32 accumulation
                    is always kept). Default bf16; pass jnp.float32 for exact f32.
    out_dtype     : output dtype (default: x.dtype). bf16 halves store traffic on v5e.
    """
    B, in_dim = x.shape
    w0, b0 = params["w0"], params["b0"]
    w1, b1 = params["w1"], params["b1"]
    w2, b2 = params["w2"], params["b2"]
    hid = w0.shape[0]
    out_dim = w2.shape[0]
    assert w0.shape == (hid, in_dim) and w1.shape == (hid, hid) and w2.shape == (out_dim, hid)

    compute_dtype = jnp.dtype(weights_dtype) if weights_dtype is not None else x.dtype
    out_dtype = jnp.dtype(out_dtype) if out_dtype is not None else x.dtype

    # --- batch tiling -------------------------------------------------------
    # Pad B to the 128-lane granule, then split into equal 128-aligned tiles so
    # the last tile never drags a near-full tile of padding.  Force >= 2 grid
    # steps once there are >= 256 padded rows so both v7x TensorCores get work.
    b128 = _round_up(max(B, 1), 128)
    n_tiles = _cdiv(b128, max(_round_up(tile_b, 128), 128))
    if b128 >= 256:
        n_tiles = max(n_tiles, 2)
    tile = _round_up(_cdiv(b128, n_tiles), 128)
    b_pad = tile * n_tiles

    # --- layout plumbing (pad only; no transposes) --------------------------
    x_in = x.astype(compute_dtype)
    if b_pad != B:
        x_in = jnp.pad(x_in, ((0, b_pad - B), (0, 0)))

    w0c, w1c, w2c = (w.astype(compute_dtype) for w in (w0, w1, w2))
    # Bias add / ReLU stay in f32 on all generations (only the dots use bf16).
    b0c = b0.astype(jnp.float32).reshape(hid, 1)
    b1c = b1.astype(jnp.float32).reshape(hid, 1)
    b2c = b2.astype(jnp.float32).reshape(1, out_dim)

    const = lambda shape: pl.BlockSpec(shape, lambda i: (0, 0))  # grid-invariant

    out = pl.pallas_call(
        _mlp_kernel,
        out_shape=jax.ShapeDtypeStruct((b_pad, out_dim), out_dtype),
        grid=(n_tiles,),
        in_specs=[
            pl.BlockSpec((tile, in_dim), lambda i: (i, 0)),  # x: contiguous per-step DMA
            const((hid, in_dim)),    # w0 (resident across grid)
            const((hid, 1)),         # b0
            const((hid, hid)),       # w1
            const((hid, 1)),         # b1
            const((out_dim, hid)),   # w2
            const((1, out_dim)),     # b2
        ],
        out_specs=pl.BlockSpec((tile, out_dim), lambda i: (i, 0)),
        compiler_params=pltpu.CompilerParams(
            # Batch tiles are independent: shards across the 2 TCs on v7x,
            # a no-op on single-TC v5e/v6e.
            dimension_semantics=("parallel",),
        ),
    )(x_in, w0c, b0c, w1c, b1c, w2c, b2c)

    return out[:B] if b_pad != B else out


def init_params(key, input_dim, hidden_dim, output_dim):
    """PyTorch nn.Linear layout + init: W (out, in), b (out,), U(+/- 1/sqrt(fan_in))."""
    ks = jax.random.split(key, 6)

    def linear(kw, kb, fan_in, fan_out):
        bound = 1.0 / jnp.sqrt(jnp.float32(fan_in))
        w = jax.random.uniform(kw, (fan_out, fan_in), jnp.float32, -bound, bound)
        b = jax.random.uniform(kb, (fan_out,), jnp.float32, -bound, bound)
        return w, b

    w0, b0 = linear(ks[0], ks[1], input_dim, hidden_dim)
    w1, b1 = linear(ks[2], ks[3], hidden_dim, hidden_dim)
    w2, b2 = linear(ks[4], ks[5], hidden_dim, output_dim)
    return {"w0": w0, "b0": b0, "w1": w1, "b1": b1, "w2": w2, "b2": b2}


def reference_mlp(x, p):
    h = jnp.maximum(x @ p["w0"].T + p["b0"], 0.0)
    h = jnp.maximum(h @ p["w1"].T + p["b1"], 0.0)
    return h @ p["w2"].T + p["b2"]


if __name__ == "__main__":
    # ContinuousActionEmbedding(output_dim=32, input_dim=8, hidden_dim=32, hidden_depth=2)
    batch = 16        # flattened (batch * seq) continuous action steps
    input_dim = 8
    hidden_dim = 32
    output_dim = 32

    key = jax.random.PRNGKey(0)
    k_x, k_p = jax.random.split(key)
    x = jax.random.normal(k_x, (batch, input_dim), jnp.float32)
    params = init_params(k_p, input_dim, hidden_dim, output_dim)
    ref = reference_mlp(x, params)

    # Exact f32 path -> tight tolerance.
    out_f32 = jax.block_until_ready(
        continuous_action_embedding(x, params, weights_dtype=jnp.float32))
    assert out_f32.shape == (batch, output_dim)
    assert jnp.allclose(out_f32, ref, atol=1e-5, rtol=1e-5), "f32 mismatch vs reference"

    # Default bf16-MXU path (f32 accumulation) -> looser tolerance.
    out_bf16 = jax.block_until_ready(continuous_action_embedding(x, params))
    assert out_bf16.shape == (batch, output_dim)
    assert jnp.allclose(out_bf16, ref, atol=3e-2, rtol=3e-2), "bf16 mismatch vs reference"

    # Ragged batch (not a multiple of 128) exercises the padded-tail path.
    x2 = jax.random.normal(jax.random.PRNGKey(1), (5, input_dim), jnp.float32)
    out2 = jax.block_until_ready(
        continuous_action_embedding(x2, params, weights_dtype=jnp.float32))
    assert jnp.allclose(out2, reference_mlp(x2, params), atol=1e-5, rtol=1e-5), "ragged mismatch"

    print("KERNEL_OK")
</pallas_src>

<mosaic_0001>
module attributes {stable_mosaic.version = 11 : i64} {
  func.func @_mlp_kernel(%arg0: i32, %arg1: memref<128x8xf32, #tpu.memory_space<vmem>>, %arg2: memref<32x8xf32, #tpu.memory_space<vmem>>, %arg3: memref<32x1xf32, #tpu.memory_space<vmem>>, %arg4: memref<32x32xf32, #tpu.memory_space<vmem>>, %arg5: memref<32x1xf32, #tpu.memory_space<vmem>>, %arg6: memref<32x32xf32, #tpu.memory_space<vmem>>, %arg7: memref<1x32xf32, #tpu.memory_space<vmem>>, %arg8: memref<128x32xf32, #tpu.memory_space<vmem>>) attributes {dimension_semantics = [#tpu.dimension_semantics<parallel>], iteration_bounds = array<i64: 1>, scalar_prefetch = 0 : i64, scratch_operands = 0 : i64, tpu.core_type = #tpu.core_type<tc>, window_params = [{transform_indices = @transform_0, window_bounds = array<i64: 128, 8>}, {pipeline_mode = #tpu.pipeline_mode<synchronous>, transform_indices = @transform_1, window_bounds = array<i64: 32, 8>}, {pipeline_mode = #tpu.pipeline_mode<synchronous>, transform_indices = @transform_2, window_bounds = array<i64: 32, 1>}, {pipeline_mode = #tpu.pipeline_mode<synchronous>, transform_indices = @transform_3, window_bounds = array<i64: 32, 32>}, {pipeline_mode = #tpu.pipeline_mode<synchronous>, transform_indices = @transform_4, window_bounds = array<i64: 32, 1>}, {pipeline_mode = #tpu.pipeline_mode<synchronous>, transform_indices = @transform_5, window_bounds = array<i64: 32, 32>}, {pipeline_mode = #tpu.pipeline_mode<synchronous>, transform_indices = @transform_6, window_bounds = array<i64: 1, 32>}, {transform_indices = @transform_7, window_bounds = array<i64: 128, 32>}]} {
    %c0 = arith.constant 0 : index
    %c0_0 = arith.constant 0 : index
    %0 = vector.load %arg1[%c0, %c0_0] : memref<128x8xf32, #tpu.memory_space<vmem>>, vector<128x8xf32>
    %c0_1 = arith.constant 0 : index
    %c0_2 = arith.constant 0 : index
    %1 = vector.load %arg2[%c0_1, %c0_2] : memref<32x8xf32, #tpu.memory_space<vmem>>, vector<32x8xf32>
    %cst = arith.constant dense<0.000000e+00> : vector<32x128xf32>
    %2 = tpu.matmul %1, %0, %cst {dimension_numbers = #tpu.dot_dimension_numbers<[1], [1], [0], [0], [0, 0, 1, 0], [], []>} : vector<32x8xf32>, vector<128x8xf32>, vector<32x128xf32> -> vector<32x128xf32>
    %c0_3 = arith.constant 0 : index
    %c0_4 = arith.constant 0 : index
    %3 = vector.load %arg3[%c0_3, %c0_4] : memref<32x1xf32, #tpu.memory_space<vmem>>, vector<32x1xf32>
    %4 = vector.broadcast %3 : vector<32x1xf32> to vector<32x128xf32>
    %5 = arith.addf %2, %4 : vector<32x128xf32>
    %cst_5 = arith.constant 0.000000e+00 : f32
    %6 = vector.broadcast %cst_5 : f32 to vector<32x128xf32>
    %7 = arith.maximumf %5, %6 : vector<32x128xf32>
    %c0_6 = arith.constant 0 : index
    %c0_7 = arith.constant 0 : index
    %8 = vector.load %arg4[%c0_6, %c0_7] : memref<32x32xf32, #tpu.memory_space<vmem>>, vector<32x32xf32>
    %cst_8 = arith.constant dense<0.000000e+00> : vector<32x128xf32>
    %9 = tpu.matmul %8, %7, %cst_8 {dimension_numbers = #tpu.dot_dimension_numbers<[1], [0], [0], [1], [0, 0, 1, 1], [], []>} : vector<32x32xf32>, vector<32x128xf32>, vector<32x128xf32> -> vector<32x128xf32>
    %c0_9 = arith.constant 0 : index
    %c0_10 = arith.constant 0 : index
    %10 = vector.load %arg5[%c0_9, %c0_10] : memref<32x1xf32, #tpu.memory_space<vmem>>, vector<32x1xf32>
    %11 = vector.broadcast %10 : vector<32x1xf32> to vector<32x128xf32>
    %12 = arith.addf %9, %11 : vector<32x128xf32>
    %cst_11 = arith.constant 0.000000e+00 : f32
    %13 = vector.broadcast %cst_11 : f32 to vector<32x128xf32>
    %14 = arith.maximumf %12, %13 : vector<32x128xf32>
    %c0_12 = arith.constant 0 : index
    %c0_13 = arith.constant 0 : index
    %15 = vector.load %arg6[%c0_12, %c0_13] : memref<32x32xf32, #tpu.memory_space<vmem>>, vector<32x32xf32>
    %cst_14 = arith.constant dense<0.000000e+00> : vector<128x32xf32>
    %16 = tpu.matmul %14, %15, %cst_14 {dimension_numbers = #tpu.dot_dimension_numbers<[0], [1], [1], [0], [0, 1, 1, 0], [], []>} : vector<32x128xf32>, vector<32x32xf32>, vector<128x32xf32> -> vector<128x32xf32>
    %c0_15 = arith.constant 0 : index
    %c0_16 = arith.constant 0 : index
    %17 = vector.load %arg7[%c0_15, %c0_16] : memref<1x32xf32, #tpu.memory_space<vmem>>, vector<1x32xf32>
    %18 = vector.broadcast %17 : vector<1x32xf32> to vector<128x32xf32>
    %19 = arith.addf %16, %18 : vector<128x32xf32>
    %c0_17 = arith.constant 0 : index
    %c0_18 = arith.constant 0 : index
    %20 = vector.load %arg8[%c0_17, %c0_18] : memref<128x32xf32, #tpu.memory_space<vmem>>, vector<128x32xf32>
    tpu.vector_store %arg8[%c0_17, %c0_18], %19 {strides = array<i32>} : memref<128x32xf32, #tpu.memory_space<vmem>>, vector<128x32xf32>,
    return
  }
  func.func @transform_0(%arg0: i32) -> (i32, i32) {
    %c0_i32 = arith.constant 0 : i32
    %c0_i32_0 = arith.constant 0 : i32
    return %arg0, %c0_i32 : i32, i32
  }
  func.func @transform_1(%arg0: i32) -> (i32, i32) {
    %c0_i32 = arith.constant 0 : i32
    %c0_i32_0 = arith.constant 0 : i32
    %c0_i32_1 = arith.constant 0 : i32
    return %c0_i32, %c0_i32_0 : i32, i32
  }
  func.func @transform_2(%arg0: i32) -> (i32, i32) {
    %c0_i32 = arith.constant 0 : i32
    %c0_i32_0 = arith.constant 0 : i32
    %c0_i32_1 = arith.constant 0 : i32
    return %c0_i32, %c0_i32_0 : i32, i32
  }
  func.func @transform_3(%arg0: i32) -> (i32, i32) {
    %c0_i32 = arith.constant 0 : i32
    %c0_i32_0 = arith.constant 0 : i32
    %c0_i32_1 = arith.constant 0 : i32
    return %c0_i32, %c0_i32_0 : i32, i32
  }
  func.func @transform_4(%arg0: i32) -> (i32, i32) {
    %c0_i32 = arith.constant 0 : i32
    %c0_i32_0 = arith.constant 0 : i32
    %c0_i32_1 = arith.constant 0 : i32
    return %c0_i32, %c0_i32_0 : i32, i32
  }
  func.func @transform_5(%arg0: i32) -> (i32, i32) {
    %c0_i32 = arith.constant 0 : i32
    %c0_i32_0 = arith.constant 0 : i32
    %c0_i32_1 = arith.constant 0 : i32
    return %c0_i32, %c0_i32_0 : i32, i32
  }
  func.func @transform_6(%arg0: i32) -> (i32, i32) {
    %c0_i32 = arith.constant 0 : i32
    %c0_i32_0 = arith.constant 0 : i32
    %c0_i32_1 = arith.constant 0 : i32
    return %c0_i32, %c0_i32_0 : i32, i32
  }
  func.func @transform_7(%arg0: i32) -> (i32, i32) {
    %c0_i32 = arith.constant 0 : i32
    %c0_i32_0 = arith.constant 0 : i32
    return %arg0, %c0_i32 : i32, i32
  }
}

</mosaic_0001>

<bundles_post_ra>
// kernel: tpu_custom_call.1
= control target key start
LH: loop header
LB: loop body
LE: loop exit
PB: predicated region body
PF: predicated region fallthrough
CT: control target
= control target key end

     0   :  { %vm70_vm0 = vcmask 64512   ;;  %v867_v3 = vmov 0   ;;  %vm248_vm2 = vcmask 261120   ;;  %s1147_s0 = inlined_call_operand.vmem [shape: f32[128,8], index: 0, kind: input, shape index: {}]   ;;  %s1148_s1 = inlined_call_operand.vmem [shape: f32[32,8], index: 1, kind: input, shape index: {}]   ;;  %s1149_s2 = inlined_call_operand.vmem [shape: f32[32,1], index: 2, kind: input, shape index: {}]   ;;  %s1150_s4 = inlined_call_operand.vmem [shape: f32[32,1], index: 4, kind: input, shape index: {}]   ;;  %s1151_s3 = inlined_call_operand.vmem [shape: f32[32,32], index: 3, kind: input, shape index: {}]   ;;  %s1152_s5 = inlined_call_operand.vmem [shape: f32[32,32], index: 5, kind: input, shape index: {}]   ;;  %s1153_s6 = inlined_call_operand.vmem [shape: f32[1,32], index: 6, kind: input, shape index: {}]   ;;  %s1154_s7 = inlined_call_operand.vmem [shape: f32[128,32], index: 7, kind: output, shape index: {}]  }
   0x1   :  { %v26_v0 = vld [vmem:[%s1147_s0] sm:$0xff]  ;;  %v27_v1 = vld [vmem:[%s1147_s0 + $0x8] sm:$0xff]  ;;  %vm916_vm1 = vmpackc.low %vm70_vm0, %vm70_vm0  ;;  %865 = vset.pattern.permute.xlu0 %v867_v3  ;;  %866 = vset.pattern.permute.xlu1 %v867_v3 }
   0x2   :  { %v795_v4 = vpack.c.bf16 %v27_v1, %v26_v0  ;;  %v28_v5 = vld [vmem:[%s1147_s0 + $0x10] sm:$0xff]  ;;  %v29_v6 = vld [vmem:[%s1147_s0 + $0x18] sm:$0xff]  ;;  %v42_v8 = vld [vmem:[%s1148_s1] sm:$0xff] }
   0x3   :  { %v801_v7 = vpack.c.bf16 %v29_v6, %v28_v5  ;;  %v30_v9 = vld [vmem:[%s1147_s0 + $0x20] sm:$0xff]  ;;  %v31_v10 = vld [vmem:[%s1147_s0 + $0x28] sm:$0xff]  ;;  %743 = vmatprep.mubr.msk.f32.mxu0 %vm70_vm0, %v42_v8  ;;  %v48_v12 = vld [vmem:[%s1149_s2 + $0x10] sm:$0xff] }
   0x4   :  { %797 = vmatprep.subr.msk.bf16.mxu0 %vm916_vm1, %v795_v4  ;;  %v46_v11 = vld [vmem:[%s1149_s2] sm:$0xff]  ;;  %62 = vperm.xlu1 %866, %v48_v12   ;;  %v807_v13 = vpack.c.bf16 %v31_v10, %v30_v9  ;;  %v47_v14 = vld [vmem:[%s1149_s2 + $0x8] sm:$0xff]  ;;  %v49_v15 = vld [vmem:[%s1149_s2 + $0x18] sm:$0xff] }
   0x5   :  { %800 = vmatpush3.bf16.xpose.msk.msra.mxu0 %vm916_vm1, %v795_v4  ;;  %52 = vperm.xlu0 %865, %v46_v11   ;;  %v224_v16 = vld [vmem:[%s1150_s4] sm:$0xff]  ;;  %v32_v17 = vld [vmem:[%s1147_s0 + $0x30] sm:$0xff]  ;;  %v33_v18 = vld [vmem:[%s1147_s0 + $0x38] sm:$0xff] }
   0x6   :  { %803 = vmatprep.subr.msk.bf16.mxu0 %vm916_vm1, %v801_v7  ;;  %v225_v19 = vld [vmem:[%s1150_s4 + $0x8] sm:$0xff]  ;;  %v813_v20 = vpack.c.bf16 %v33_v18, %v32_v17  ;;  %v226_v21 = vld [vmem:[%s1150_s4 + $0x10] sm:$0xff]  ;;  %v227_v22 = vld [vmem:[%s1150_s4 + $0x18] sm:$0xff] }
   0x7   :  { %v34_v23 = vld [vmem:[%s1147_s0 + $0x40] sm:$0xff]  ;;  %v35_v24 = vld [vmem:[%s1147_s0 + $0x48] sm:$0xff]  ;;  %v36_v26 = vld [vmem:[%s1147_s0 + $0x50] sm:$0xff] }
   0x8   :  { %67 = vperm.xlu1 %866, %v49_v15   ;;  %v819_v25 = vpack.c.bf16 %v35_v24, %v34_v23  ;;  %v37_v27 = vld [vmem:[%s1147_s0 + $0x58] sm:$0xff]  ;;  %v38_v29 = vld [vmem:[%s1147_s0 + $0x60] sm:$0xff]  ;;  %v39_v30 = vld [vmem:[%s1147_s0 + $0x68] sm:$0xff] }
   0x9   :  { %57 = vperm.xlu0 %865, %v47_v14   ;;  %v825_v28 = vpack.c.bf16 %v37_v27, %v36_v26  ;;  %v831_v31 = vpack.c.bf16 %v39_v30, %v38_v29  ;;  %v40_v32 = vld [vmem:[%s1147_s0 + $0x70] sm:$0xff]  ;;  %v41_v33 = vld [vmem:[%s1147_s0 + $0x78] sm:$0xff]  ;;  %v43_v35 = vld [vmem:[%s1148_s1 + $0x8] sm:$0xff] }
   0xa   :  { %v837_v34 = vpack.c.bf16 %v41_v33, %v40_v32  ;;  %v44_v36 = vld [vmem:[%s1148_s1 + $0x10] sm:$0xff]  ;;  %v45_v37 = vld [vmem:[%s1148_s1 + $0x18] sm:$0xff]  ;;  %v220_v38 = vld [vmem:[%s1151_s3] sm:$0xff] }
   0xb   :  { %757 = vmatprep.mubr.msk.f32.mxu1 %vm248_vm2, %v220_v38  ;;  %v221_v57 = vld [vmem:[%s1151_s3 + $0x8] sm:$0xff]  ;;  %v222_v58 = vld [vmem:[%s1151_s3 + $0x10] sm:$0xff]  ;;  %v223_v59 = vld [vmem:[%s1151_s3 + $0x18] sm:$0xff] }
   0xc   :  { %235 = vperm.xlu1 %866, %v225_v19   ;;  %vm852_vm3 = vmpackc.low %vm248_vm2, %vm248_vm2  ;;  %v350_v60 = vld [vmem:[%s1152_s5] sm:$0xff]  ;;  %v351_v61 = vld [vmem:[%s1152_s5 + $0x8] sm:$0xff] }
   0xd   :  { %806 = vmatpush3.bf16.xpose.msk.msra.mxu0 %vm916_vm1, %v801_v7  ;;  %230 = vperm.xlu0 %865, %v224_v16   ;;  %v352_v62 = vld [vmem:[%s1152_s5 + $0x10] sm:$0xff]  ;;  %v851_v63 = vpack.c.bf16 %v351_v61, %v350_v60  ;;  %v353_v0 = vld [vmem:[%s1152_s5 + $0x18] sm:$0xff] }
   0xe   :  { %809 = vmatprep.subr.msk.bf16.mxu0 %vm916_vm1, %v807_v13  ;;  %v857_v1 = vpack.c.bf16 %v353_v0, %v352_v62 }
  0x10   :  { %245 = vperm.xlu1 %866, %v227_v22  }
  0x11   :  { %240 = vperm.xlu0 %865, %v226_v21  }
  0x15   :  { %812 = vmatpush3.bf16.xpose.msk.msra.mxu0 %vm916_vm1, %v807_v13 }
  0x16   :  { %815 = vmatprep.subr.msk.bf16.mxu0 %vm916_vm1, %v813_v20 }
  0x1d   :  { %818 = vmatpush3.bf16.xpose.msk.msra.mxu0 %vm916_vm1, %v813_v20 }
  0x1e   :  { %821 = vmatprep.subr.msk.bf16.mxu0 %vm916_vm1, %v819_v25 }
  0x25   :  { %824 = vmatpush3.bf16.xpose.msk.msra.mxu0 %vm916_vm1, %v819_v25 }
  0x26   :  { %827 = vmatprep.subr.msk.bf16.mxu0 %vm916_vm1, %v825_v28 }
  0x2d   :  { %830 = vmatpush3.bf16.xpose.msk.msra.mxu0 %vm916_vm1, %v825_v28 }
  0x2e   :  { %833 = vmatprep.subr.msk.bf16.mxu0 %vm916_vm1, %v831_v31 }
  0x35   :  { %836 = vmatpush3.bf16.xpose.msk.msra.mxu0 %vm916_vm1, %v831_v31 }
  0x36   :  { %839 = vmatprep.subr.msk.bf16.mxu0 %vm916_vm1, %v837_v34 }
  0x3d   :  { %842 = vmatpush3.bf16.xpose.msk.msra.mxu0 %vm916_vm1, %v837_v34  ;;  %v642_v34 = vld [vmem:[%s1153_s6] ss:$0 sm:$0xff] }
  0x44   :  { %744 = vmatmul.mubr.msk.f32.vlgmr.msra.gmra.mrb[0].mxu0 %vm70_vm0, %v43_v35 }
  0x45   :  { %746 = vmatprep.mubr.msk.f32.mxu0 %vm70_vm0, %v44_v36 }
  0x48   :  { %747 = vmatmul.mubr.msk.f32.gmra.mrb[2].mxu0 %vm70_vm0, %v45_v37 }
  0x83   :  { %v63_v40 = vpop.permute.xlu1 %62 }
  0x84   :  { %v53_v39 = vpop.permute.xlu0 %52 }
  0x87   :  { %v68_v47 = vpop.permute.xlu1 %67 }
  0x88   :  { %v58_v41 = vpop.permute.xlu0 %57 }
  0x8b   :  { %v236_v6 = vpop.permute.xlu1 %235 }
  0x8c   :  { %v231_v3 = vpop.permute.xlu0 %230 }
  0x8f   :  { %v246_v14 = vpop.permute.xlu1 %245 }
  0x90   :  { %v241_v11 = vpop.permute.xlu0 %240 }
 0x117   :  { %v745_v42 = vpop.f32.mrb[0].mxu0 }
 0x118   :  { %v203_v43 = vadd.f32 %v745_v42, %v58_v41  ;;  %v197_v44 = vpop.f32.mrb[1].mxu0 }
 0x119   :  { %v198_v45 = vadd.f32 %v197_v44, %v53_v39 }
 0x11a   :  { %v217_v46 = vmax.f32 %v203_v43, 0.0 }
 0x11b   :  { %v216_v48 = vmax.f32 %v198_v45, 0.0  ;;  %v748_v49 = vpop.f32.mrb[2].mxu0 }
 0x11c   :  { %v213_v50 = vadd.f32 %v748_v49, %v68_v47  ;;  %v207_v51 = vpop.f32.mrb[3].mxu0 }
 0x11d   :  { %v208_v52 = vadd.f32 %v207_v51, %v63_v40  ;;  %v843_v53 = vpack.c.bf16 %v217_v46, %v216_v48 }
 0x11e   :  { %v219_v54 = vmax.f32 %v213_v50, 0.0 }
 0x11f   :  { %v218_v55 = vmax.f32 %v208_v52, 0.0  ;;  %844 = vmatprep.subr.bf16.mxu1 %v843_v53 }
 0x120   :  { %846 = vmatpush3.bf16.msra.mxu1 %v843_v53 }
 0x121   :  { %v847_v56 = vpack.c.bf16 %v219_v54, %v218_v55 }
 0x123   :  { %848 = vmatprep.subr.bf16.mxu1 %v847_v56 }
 0x124   :  { %850 = vmatpush3.bf16.msra.mxu1 %v847_v56 }
 0x125   :  { %853 = vmatprep.subr.msk.bf16.mxu1 %vm852_vm3, %v851_v63 }
 0x127   :  { %758 = vmatmul.mubr.msk.f32.vlgmr.msra.gmra.mrb[0].mxu1 %vm248_vm2, %v221_v57 }
 0x128   :  { %760 = vmatprep.mubr.msk.f32.mxu1 %vm248_vm2, %v222_v58 }
 0x12b   :  { %761 = vmatmul.mubr.msk.f32.gmra.mrb[2].mxu1 %vm248_vm2, %v223_v59 }
 0x12d   :  { %856 = vmatpush3.bf16.xpose.msk.msra.mxu1 %vm852_vm3, %v851_v63 }
 0x12e   :  { %859 = vmatprep.subr.msk.bf16.mxu1 %vm852_vm3, %v857_v1 }
 0x135   :  { %862 = vmatpush3.bf16.xpose.msk.msra.mxu1 %vm852_vm3, %v857_v1 }
 0x1fa   :  { %v759_v2 = vpop.f32.mrb[0].mxu1 }
 0x1fb   :  { %v327_v4 = vpop.f32.mrb[1].mxu1  ;;  %v333_v7 = vadd.f32 %v759_v2, %v236_v6 }
 0x1fc   :  { %v328_v5 = vadd.f32 %v327_v4, %v231_v3 }
 0x1fd   :  { %v347_v12 = vmax.f32 %v333_v7, 0.0 }
 0x1fe   :  { %v346_v8 = vmax.f32 %v328_v5, 0.0  ;;  %v762_v9 = vpop.f32.mrb[2].mxu1 }
 0x1ff   :  { %v337_v10 = vpop.f32.mrb[3].mxu1  ;;  %v343_v15 = vadd.f32 %v762_v9, %v246_v14 }
 0x200   :  { %361 = vxpose.xlu0.b32.start [1/4] (short) %v346_v8, 128  ;;  %v338_v13 = vadd.f32 %v337_v10, %v241_v11 }
 0x201   :  { %v349_v17 = vmax.f32 %v343_v15, 0.0 }
 0x202   :  { %v348_v16 = vmax.f32 %v338_v13, 0.0 }
 0x204   :  { %362 = vxpose.xlu0.b32.cont [2/4] (short) %v347_v12, 128 }
 0x208   :  { %363 = vxpose.xlu0.b32.cont [3/4] (short) %v348_v16, 128 }
 0x20c   :  { %364 = vxpose.xlu0.b32.end [4/4] (short) %v349_v17, 128 }
 0x280   :  { %v377_v18 = vpop.trf.xlu0 }
 0x281   :  { %771 = vmatprep.mubr.msk.f32.mxu1 %vm248_vm2, %v377_v18 }
 0x284   :  { %v378_v19 = vpop.trf.xlu0 }
 0x285   :  { %772 = vmatmul.mubr.msk.f32.vlgmr.msra.gmra.mrb[4].mxu1 %vm248_vm2, %v378_v19 }
 0x288   :  { %v379_v20 = vpop.trf.xlu0 }
 0x289   :  { %774 = vmatprep.mubr.msk.f32.mxu1 %vm248_vm2, %v379_v20 }
 0x28c   :  { %v380_v21 = vpop.trf.xlu0 }
 0x28d   :  { %775 = vmatmul.mubr.msk.f32.gmra.mrb[6].mxu1 %vm248_vm2, %v380_v21 }
 0x290   :  { %v381_v22 = vpop.trf.xlu0 }
 0x291   :  { %777 = vmatprep.mubr.msk.f32.mxu1 %vm248_vm2, %v381_v22 }
 0x294   :  { %v382_v23 = vpop.trf.xlu0 }
 0x295   :  { %778 = vmatmul.mubr.msk.f32.gmra.mrb[8].mxu1 %vm248_vm2, %v382_v23 }
 0x298   :  { %v383_v24 = vpop.trf.xlu0 }
 0x299   :  { %780 = vmatprep.mubr.msk.f32.mxu1 %vm248_vm2, %v383_v24 }
 0x29c   :  { %v384_v25 = vpop.trf.xlu0 }
 0x29d   :  { %781 = vmatmul.mubr.msk.f32.gmra.mrb[10].mxu1 %vm248_vm2, %v384_v25 }
 0x2a0   :  { %v385_v26 = vpop.trf.xlu0 }
 0x2a1   :  { %783 = vmatprep.mubr.msk.f32.mxu1 %vm248_vm2, %v385_v26 }
 0x2a4   :  { %v386_v27 = vpop.trf.xlu0 }
 0x2a5   :  { %784 = vmatmul.mubr.msk.f32.gmra.mrb[12].mxu1 %vm248_vm2, %v386_v27 }
 0x2a8   :  { %v387_v28 = vpop.trf.xlu0 }
 0x2a9   :  { %786 = vmatprep.mubr.msk.f32.mxu1 %vm248_vm2, %v387_v28 }
 0x2ac   :  { %v388_v29 = vpop.trf.xlu0 }
 0x2ad   :  { %787 = vmatmul.mubr.msk.f32.gmra.mrb[14].mxu1 %vm248_vm2, %v388_v29 }
 0x2b0   :  { %v389_v30 = vpop.trf.xlu0 }
 0x2b1   :  { %789 = vmatprep.mubr.msk.f32.mxu1 %vm248_vm2, %v389_v30 }
 0x2b4   :  { %v390_v31 = vpop.trf.xlu0 }
 0x2b5   :  { %790 = vmatmul.mubr.msk.f32.gmra.mrb[16].mxu1 %vm248_vm2, %v390_v31 }
 0x2b8   :  { %v391_v32 = vpop.trf.xlu0 }
 0x2b9   :  { %792 = vmatprep.mubr.msk.f32.mxu1 %vm248_vm2, %v391_v32 }
 0x2bc   :  { %v392_v33 = vpop.trf.xlu0 }
 0x2bd   :  { %793 = vmatmul.mubr.msk.f32.gmra.mrb[18].mxu1 %vm248_vm2, %v392_v33 }
 0x358   :  { %v773_v35 = vpop.f32.mrb[4].mxu1 }
 0x359   :  { %v525_v36 = vadd.f32 %v773_v35, %v642_v34  ;;  %v519_v37 = vpop.f32.mrb[5].mxu1 }
 0x35a   :  { %v520_v38 = vadd.f32 %v642_v34, %v519_v37 }
 0x35b   :  { %599 = vst.msk [vmem:[%s1154_s7 + $0x8] sm:$0xff] %vm248_vm2, %v525_v36 }
 0x35c   :  { %598 = vst.msk [vmem:[%s1154_s7] sm:$0xff] %vm248_vm2, %v520_v38 }
 0x360   :  { %v776_v39 = vpop.f32.mrb[6].mxu1 }
 0x361   :  { %v535_v40 = vadd.f32 %v776_v39, %v642_v34  ;;  %v529_v41 = vpop.f32.mrb[7].mxu1 }
 0x362   :  { %v530_v42 = vadd.f32 %v642_v34, %v529_v41 }
 0x363   :  { %601 = vst.msk [vmem:[%s1154_s7 + $0x18] sm:$0xff] %vm248_vm2, %v535_v40 }
 0x364   :  { %600 = vst.msk [vmem:[%s1154_s7 + $0x10] sm:$0xff] %vm248_vm2, %v530_v42 }
 0x368   :  { %v779_v43 = vpop.f32.mrb[8].mxu1 }
 0x369   :  { %v545_v44 = vadd.f32 %v779_v43, %v642_v34  ;;  %v539_v45 = vpop.f32.mrb[9].mxu1 }
 0x36a   :  { %v540_v46 = vadd.f32 %v642_v34, %v539_v45 }
 0x36b   :  { %603 = vst.msk [vmem:[%s1154_s7 + $0x28] sm:$0xff] %vm248_vm2, %v545_v44 }
 0x36c   :  { %602 = vst.msk [vmem:[%s1154_s7 + $0x20] sm:$0xff] %vm248_vm2, %v540_v46 }
 0x370   :  { %v782_v47 = vpop.f32.mrb[10].mxu1 }
 0x371   :  { %v555_v48 = vadd.f32 %v782_v47, %v642_v34  ;;  %v549_v49 = vpop.f32.mrb[11].mxu1 }
 0x372   :  { %v550_v50 = vadd.f32 %v642_v34, %v549_v49 }
 0x373   :  { %605 = vst.msk [vmem:[%s1154_s7 + $0x38] sm:$0xff] %vm248_vm2, %v555_v48 }
 0x374   :  { %604 = vst.msk [vmem:[%s1154_s7 + $0x30] sm:$0xff] %vm248_vm2, %v550_v50 }
 0x378   :  { %v785_v51 = vpop.f32.mrb[12].mxu1 }
 0x379   :  { %v565_v52 = vadd.f32 %v785_v51, %v642_v34  ;;  %v559_v53 = vpop.f32.mrb[13].mxu1 }
 0x37a   :  { %v560_v54 = vadd.f32 %v642_v34, %v559_v53 }
 0x37b   :  { %607 = vst.msk [vmem:[%s1154_s7 + $0x48] sm:$0xff] %vm248_vm2, %v565_v52 }
 0x37c   :  { %606 = vst.msk [vmem:[%s1154_s7 + $0x40] sm:$0xff] %vm248_vm2, %v560_v54 }
 0x380   :  { %v788_v55 = vpop.f32.mrb[14].mxu1 }
 0x381   :  { %v575_v56 = vadd.f32 %v788_v55, %v642_v34  ;;  %v569_v57 = vpop.f32.mrb[15].mxu1 }
 0x382   :  { %v570_v58 = vadd.f32 %v642_v34, %v569_v57 }
 0x383   :  { %609 = vst.msk [vmem:[%s1154_s7 + $0x58] sm:$0xff] %vm248_vm2, %v575_v56 }
 0x384   :  { %608 = vst.msk [vmem:[%s1154_s7 + $0x50] sm:$0xff] %vm248_vm2, %v570_v58 }
 0x388   :  { %v791_v59 = vpop.f32.mrb[16].mxu1 }
 0x389   :  { %v585_v60 = vadd.f32 %v791_v59, %v642_v34  ;;  %v579_v61 = vpop.f32.mrb[17].mxu1 }
 0x38a   :  { %v580_v62 = vadd.f32 %v642_v34, %v579_v61 }
 0x38b   :  { %611 = vst.msk [vmem:[%s1154_s7 + $0x68] sm:$0xff] %vm248_vm2, %v585_v60 }
 0x38c   :  { %610 = vst.msk [vmem:[%s1154_s7 + $0x60] sm:$0xff] %vm248_vm2, %v580_v62 }
 0x390   :  { %v794_v63 = vpop.f32.mrb[18].mxu1 }
 0x391   :  { %v595_v0 = vadd.f32 %v794_v63, %v642_v34  ;;  %v589_v1 = vpop.f32.mrb[19].mxu1 }
 0x392   :  { %v590_v2 = vadd.f32 %v642_v34, %v589_v1 }
 0x393   :  { %613 = vst.msk [vmem:[%s1154_s7 + $0x78] sm:$0xff] %vm248_vm2, %v595_v0 }
 0x394   :  { %612 = vst.msk [vmem:[%s1154_s7 + $0x70] sm:$0xff] %vm248_vm2, %v590_v2 }

</bundles_post_ra>
